<compile_context>
chip_gen: v7x
topology: tpu7x:2x2x1
jax: 0.10.0
libtpu: 0.0.40
codegen_flags: <defaults>
</compile_context>

<pallas_src>
import functools

import jax
import jax.numpy as jnp
from jax.experimental import pallas as pl
from jax.experimental.pallas import tpu as pltpu

EPS = 1e-6
_HEADROOM_BYTES = 8 << 20    # slack for output buffers + compiler scratch
_MIN_VMEM_LIMIT = 32 << 20


@functools.lru_cache(maxsize=None)
def _vmem_capacity_bytes():
    """Physical per-core VMEM; fall back to the smallest generation (v7x)."""
    try:
        return int(pltpu.get_tpu_info().vmem_capacity_bytes)
    except Exception:
        return 64 << 20


def _per_step_byte_target():
    """Input bytes to stream per grid step (2 inputs, one buffer each).

    ~10-12 MiB/step keeps the ~0.35 us per-step overhead under ~10% even at
    v7x's 3.2 TB/s HBM, while 2x double-buffering (2 inputs x 2 buffers
    ~= 2x this) still fits comfortably inside v7x's 64 MiB VMEM.
    """
    return min(12 << 20, _vmem_capacity_bytes() // 6)


def _round_down_128(x):
    return (x // 128) * 128


def _round_up_128(x):
    return -(-x // 128) * 128


def _upsilon_kernel(u_ref, i_ref, o_ref):
    # f32 accumulation regardless of input dtype; sublane reduce over C
    # (full (8,128) vregs -> cheap XLU reduce, no vreg-pressure blowup).
    s = u_ref[...].astype(jnp.float32) + i_ref[...].astype(jnp.float32)
    acc = jnp.sum(s * s, axis=1, keepdims=True)
    # Partial edge tiles: out-of-bounds lanes/rows hold garbage here, but
    # Pallas masks them on writeback, so any NaN/Inf there is discarded.
    o_ref[...] = jnp.maximum(jnp.sqrt(acc), jnp.float32(EPS)).astype(o_ref.dtype)


@functools.partial(jax.jit, static_argnames=("per_step_bytes",))
def upsilon_sum(u, i, *, per_step_bytes=None):
    """Pallas TPU implementation of UpsilonSum.forward(u, i).

    `per_step_bytes` overrides the per-grid-step input-byte target (testing
    knob to force small tiles / partial-tile code paths).
    """
    assert u.shape == i.shape, "u and i must have the same shape"
    assert u.dtype == i.dtype, "u and i must have the same dtype"
    B, C, H, W = u.shape
    HW = H * W

    u2 = u.reshape(B, C, HW)
    i2 = i.reshape(B, C, HW)

    in_item = jnp.dtype(u.dtype).itemsize
    out_dtype = u.dtype
    out_item = jnp.dtype(out_dtype).itemsize

    step_bytes = int(per_step_bytes) if per_step_bytes is not None \
        else _per_step_byte_target()
    # Never smaller than one 128-lane column of both inputs (large-C corner:
    # the 128-lane floor may overshoot the target; the explicit
    # vmem_limit_bytes below is sized from the actual block).
    step_bytes = max(step_bytes, 2 * C * 128 * in_item)
    per_batch_bytes = 2 * C * HW * in_item

    if B >= 2 and per_batch_bytes <= step_bytes:
        # ---- batch-blocking path: block (TB, C, HW), grid (cdiv(B, TB),) ----
        # Trailing dims (C, HW) equal the full array dims, so the block is
        # legal without (8,128) padding regardless of C / HW.
        tb = max(1, step_bytes // per_batch_bytes)
        tb = min(tb, (B + 1) // 2)   # keep >= 2 grid steps for v7x's 2 TCs
        tb = min(tb, B)
        grid = (pl.cdiv(B, tb),)
        in_specs = [pl.BlockSpec((tb, C, HW), lambda b: (b, 0, 0)),
                    pl.BlockSpec((tb, C, HW), lambda b: (b, 0, 0))]
        out_specs = pl.BlockSpec((tb, 1, HW), lambda b: (b, 0, 0))
        dim_sem = ("parallel",)
        in_block_bytes = tb * C * HW * in_item
        out_block_bytes = tb * HW * out_item
    else:
        # ---- HW tiling path: block (1, C, t_hw), grid (B, cdiv(HW, t_hw)) ----
        if HW <= 128:
            t_hw = HW                    # full-extent last dim is always legal
        else:
            t_hw = step_bytes // (2 * C * in_item)
            if t_hw >= HW:
                t_hw = HW
                if B == 1:
                    # A one-step grid would leave a v7x TensorCore idle:
                    # split HW into (at least) two lane-dense tiles.
                    t_hw = max(128, _round_up_128(-(-HW // 2)))
            else:
                t_hw = max(128, _round_down_128(t_hw))   # lane-dense multiple of 128
        grid = (B, pl.cdiv(HW, t_hw))
        in_specs = [pl.BlockSpec((1, C, t_hw), lambda b, h: (b, 0, h)),
                    pl.BlockSpec((1, C, t_hw), lambda b, h: (b, 0, h))]
        out_specs = pl.BlockSpec((1, 1, t_hw), lambda b, h: (b, 0, h))
        dim_sem = ("parallel", "parallel")
        in_block_bytes = C * t_hw * in_item
        out_block_bytes = t_hw * out_item

    # Explicit VMEM limit sized from the actual blocks (2 inputs + 1 output,
    # each double-buffered), clamped to the generation's physical capacity.
    needed = 4 * in_block_bytes + 2 * out_block_bytes
    vmem_limit = int(min(_vmem_capacity_bytes(),
                         max(needed + _HEADROOM_BYTES, _MIN_VMEM_LIMIT)))

    cost = pl.CostEstimate(
        flops=3 * B * C * HW,                 # add + square + reduce-add
        transcendentals=B * HW,               # sqrt per output element
        bytes_accessed=2 * B * C * HW * in_item + B * HW * out_item,
    )

    out = pl.pallas_call(
        _upsilon_kernel,
        out_shape=jax.ShapeDtypeStruct((B, 1, HW), out_dtype),
        grid_spec=pltpu.PrefetchScalarGridSpec(
            num_scalar_prefetch=0,
            grid=grid,
            in_specs=in_specs,
            out_specs=out_specs,
        ),
        compiler_params=pltpu.CompilerParams(
            dimension_semantics=dim_sem,
            vmem_limit_bytes=vmem_limit,
        ),
        cost_estimate=cost,
    )(u2, i2)

    return out.reshape(B, 1, H, W)


def _reference(u, i):
    s = (u + i).astype(jnp.float32)
    return jnp.maximum(
        jnp.sqrt(jnp.sum(s * s, axis=1, keepdims=True)), EPS
    ).astype(u.dtype)


if __name__ == "__main__":
    key = jax.random.PRNGKey(0)
    k_u, k_i, k_u2, k_i2, k_u3, k_i3 = jax.random.split(key, 6)

    # Case 1: canonical small shape -> batch-blocking path, grid (2,).
    B, C, H, W = 2, 4, 16, 16
    u = jax.random.normal(k_u, (B, C, H, W), dtype=jnp.float32)
    i = jax.random.normal(k_i, (B, C, H, W), dtype=jnp.float32)
    out = upsilon_sum(u, i)
    jax.block_until_ready(out)
    assert out.shape == (B, 1, H, W)
    assert jnp.allclose(out, _reference(u, i), atol=1e-5, rtol=1e-5)

    # Case 2: non-128-multiple HW, forced tiny per-step target -> HW-tiling
    # path with a partial (masked) last lane tile, grid (2, 2).
    B2, C2, H2, W2 = 2, 4, 15, 15
    u2 = jax.random.normal(k_u2, (B2, C2, H2, W2), dtype=jnp.float32)
    i2 = jax.random.normal(k_i2, (B2, C2, H2, W2), dtype=jnp.float32)
    out2 = upsilon_sum(u2, i2, per_step_bytes=4096)
    jax.block_until_ready(out2)
    assert out2.shape == (B2, 1, H2, W2)
    assert jnp.allclose(out2, _reference(u2, i2), atol=1e-5, rtol=1e-5)

    # Case 3: B == 1 -> HW axis is force-split into 2 tiles (both TCs busy),
    # with a partial last tile (HW = 2250 is not a multiple of 128).
    B3, C3, H3, W3 = 1, 4, 45, 50
    u3 = jax.random.normal(k_u3, (B3, C3, H3, W3), dtype=jnp.float32)
    i3 = jax.random.normal(k_i3, (B3, C3, H3, W3), dtype=jnp.float32)
    out3 = upsilon_sum(u3, i3)
    jax.block_until_ready(out3)
    assert out3.shape == (B3, 1, H3, W3)
    assert jnp.allclose(out3, _reference(u3, i3), atol=1e-5, rtol=1e-5)

    print("KERNEL_OK")
</pallas_src>

<mosaic_0001>
module attributes {stable_mosaic.version = 11 : i64} {
  func.func @_upsilon_kernel(%arg0: i32, %arg1: memref<1x4x256xf32, #tpu.memory_space<vmem>>, %arg2: memref<1x4x256xf32, #tpu.memory_space<vmem>>, %arg3: memref<1x1x256xf32, #tpu.memory_space<vmem>>) attributes {dimension_semantics = [#tpu.dimension_semantics<parallel>], iteration_bounds = array<i64: 2>, scalar_prefetch = 0 : i64, scratch_operands = 0 : i64, tpu.core_type = #tpu.core_type<tc>, window_params = [{transform_indices = @transform_0, window_bounds = array<i64: 1, 4, 256>}, {transform_indices = @transform_1, window_bounds = array<i64: 1, 4, 256>}, {transform_indices = @transform_2, window_bounds = array<i64: 1, 1, 256>}]} {
    %c0 = arith.constant 0 : index
    %c0_0 = arith.constant 0 : index
    %c0_1 = arith.constant 0 : index
    %0 = vector.load %arg1[%c0, %c0_0, %c0_1] : memref<1x4x256xf32, #tpu.memory_space<vmem>>, vector<1x4x256xf32>
    %c0_2 = arith.constant 0 : index
    %c0_3 = arith.constant 0 : index
    %c0_4 = arith.constant 0 : index
    %1 = vector.load %arg2[%c0_2, %c0_3, %c0_4] : memref<1x4x256xf32, #tpu.memory_space<vmem>>, vector<1x4x256xf32>
    %2 = arith.addf %0, %1 : vector<1x4x256xf32>
    %3 = arith.mulf %2, %2 : vector<1x4x256xf32>
    %cst = arith.constant dense<0.000000e+00> : vector<1x256xf32>
    %4 = vector.multi_reduction <add>, %3, %cst [1] : vector<1x4x256xf32> to vector<1x256xf32>
    %5 = vector.shape_cast %4 : vector<1x256xf32> to vector<1x1x256xf32>
    %6 = math.sqrt %5 : vector<1x1x256xf32>
    %cst_5 = arith.constant 9.99999997E-7 : f32
    %7 = vector.broadcast %cst_5 : f32 to vector<1x1x256xf32>
    %8 = arith.maximumf %6, %7 : vector<1x1x256xf32>
    %c0_6 = arith.constant 0 : index
    %c0_7 = arith.constant 0 : index
    %c0_8 = arith.constant 0 : index
    %9 = vector.load %arg3[%c0_6, %c0_7, %c0_8] : memref<1x1x256xf32, #tpu.memory_space<vmem>>, vector<1x1x256xf32>
    tpu.vector_store %arg3[%c0_6, %c0_7, %c0_8], %8 {strides = array<i32>} : memref<1x1x256xf32, #tpu.memory_space<vmem>>, vector<1x1x256xf32>,
    return
  }
  func.func @transform_0(%arg0: i32) -> (i32, i32, i32) {
    %c0_i32 = arith.constant 0 : i32
    %c0_i32_0 = arith.constant 0 : i32
    %c0_i32_1 = arith.constant 0 : i32
    return %arg0, %c0_i32, %c0_i32_0 : i32, i32, i32
  }
  func.func @transform_1(%arg0: i32) -> (i32, i32, i32) {
    %c0_i32 = arith.constant 0 : i32
    %c0_i32_0 = arith.constant 0 : i32
    %c0_i32_1 = arith.constant 0 : i32
    return %arg0, %c0_i32, %c0_i32_0 : i32, i32, i32
  }
  func.func @transform_2(%arg0: i32) -> (i32, i32, i32) {
    %c0_i32 = arith.constant 0 : i32
    %c0_i32_0 = arith.constant 0 : i32
    %c0_i32_1 = arith.constant 0 : i32
    return %arg0, %c0_i32, %c0_i32_0 : i32, i32, i32
  }
}

</mosaic_0001>

<bundles_post_ra>
// kernel: upsilon_sum.1
= control target key start
LH: loop header
LB: loop body
LE: loop exit
PB: predicated region body
PF: predicated region fallthrough
CT: control target
= control target key end

     0   :  { %s339_s9 = smov 0   ;;  %s363_s0 = inlined_call_operand.vmem [shape: f32[2,4,256], index: 0, kind: input, shape index: {}]   ;;  %s364_s1 = inlined_call_operand.vmem [shape: f32[2,4,256], index: 1, kind: input, shape index: {}]   ;;  %s365_s2 = inlined_call_operand.vmem [shape: f32[2,1,256], index: 2, kind: output, shape index: {}]  }
   0x1 LB: > { %s288_s10 = sadd.s32 4294967295, %s321_s9   ;;  %p292_p0 = scmp.ge.s32.totalorder %s321_s9, 1  ;;  %s321_s9 = sphi %s339_s9, %s12_s9  }
   0x2   : > { %p122_p1 = scmp.lt.s32.totalorder %s321_s9, 3 }
   0x4   : > { %p123_p2 = pnand %p292_p0, %p122_p1 }
   0x5   : > { %p148_p3 = scmp.lt.s32.totalorder (!%p123_p2), %s288_s10, 1  ;;  %vm169_vm0 = vcmask (!%p123_p2), 1043456   ;;  %v206_v19 = vlaneseq (!%p123_p2)  ;;  %v323_v20 = vmov (!%p123_p2), 1966171168  }
   0x6   : > { %126 = sbr.rel (%p123_p2) target bundleno = 61 (0x3d), region = 28  ;;  %v204_v21 = vunpack.c.l.s4 (!%p123_p2), %v323_v20 }
   0x7   : > { %v207_v27 = vshrl.u32 (!%p123_p2), %v206_v19, 7  ;;  %vm220_vm5 = vcmp.lt.s32.totalorder (!%p123_p2), %v206_v19, 256 }
   0x8   : > { %v205_v30 = vunpack.c.0.s8 (!%p123_p2), %v204_v21 }
   0xa   : > { %v208_v36 = vsub.s32 (!%p123_p2), %v205_v30, %v207_v27 }
   0xd   : > { %s367_s10 = smov (!%p148_p3, %s288_s10), 1 }
   0xe   : > { %s300_s11 = sshll.u32 %s367_s10, 3  ;;  %s297_s18 = sshll.u32 %s367_s10, 1 }
   0xf   : > { %s152_s14 = scalar_lea.vmem %s363_s0, %s300_s11  ;;  %s157_s17 = scalar_lea.vmem %s364_s1, %s300_s11 }
  0x10   : > { %v162_v0 = vld [vmem:[%s152_s14] sm:$0xff]  ;;  %s161_s21 = scalar_lea.vmem %s365_s2, %s297_s18 }
  0x11   : > { %v163_v1 = vld [vmem:[%s157_s17] sm:$0xff] }
  0x12   : > { %v164_v2 = vadd.f32 %v163_v1, %v162_v0 }
  0x14   : > { %v165_v3 = vmul.f32 %v164_v2, %v164_v2 }
  0x16   : > { %v167_v4 = vcombine.high %v165_v3, %v165_v3  ;;  %v170_v5 = vsel %vm169_vm0, %v165_v3, 0.0 }
  0x17   : > { %v171_v6 = vrot.slane %v170_v5, 4 }
  0x18   : > { %v177_v7 = vsel %vm169_vm0, %v167_v4, 0.0 }
  0x19   : > { %v172_v8 = vadd.f32 %v171_v6, %v170_v5  ;;  %v178_v9 = vrot.slane %v177_v7, 4 }
  0x1b   : > { %v173_v10 = vrot.slane %v172_v8, 2  ;;  %v179_v11 = vadd.f32 %v178_v9, %v177_v7 }
  0x1d   : > { %v174_v12 = vadd.f32 %v173_v10, %v172_v8  ;;  %v180_v13 = vrot.slane %v179_v11, 2 }
  0x1f   : > { %v175_v14 = vrot.slane %v174_v12, 1  ;;  %v181_v15 = vadd.f32 %v180_v13, %v179_v11 }
  0x21   : > { %v176_v16 = vadd.f32 %v175_v14, %v174_v12  ;;  %v182_v17 = vrot.slane %v181_v15, 1 }
  0x23   : > { %v183_v18 = vadd.f32 %v182_v17, %v181_v15  ;;  %311 = vrsqrt.f32 %v176_v16  ;;  %vm186_vm1 = vcmp.eq.f32.partialorder %v176_v16, inf  ;;  %v189_v23 = vand.u32 2147483648, %v176_v16 }
  0x24   : > { %vm188_vm2 = vcmp.eq.f32.partialorder %v176_v16, 0.0 }
  0x25   : > { %313 = vrsqrt.f32 %v183_v18  ;;  %vm193_vm3 = vcmp.eq.f32.partialorder %v183_v18, inf  ;;  %v196_v26 = vand.u32 2147483648, %v183_v18  ;;  %vm195_vm4 = vcmp.eq.f32.partialorder %v183_v18, 0.0 }
  0x2d   : > { %v312_v22 = vpop.eup %311 }
  0x2e   : > { %v185_v24 = vmul.f32 %v312_v22, %v176_v16 }
  0x2f   : > { %v314_v25 = vpop.eup %313 }
  0x30   : > { %v187_v28 = vsel %vm186_vm1, %v176_v16, %v185_v24  ;;  %v192_v29 = vmul.f32 %v314_v25, %v183_v18 }
  0x31   : > { %v190_v31 = vsel %vm188_vm2, %v189_v23, %v187_v28 }
  0x32   : > { %v194_v32 = vsel %vm193_vm3, %v183_v18, %v192_v29  ;;  %v198_v33 = vmax.f32 %v190_v31, 1e-06 }
  0x33   : > { %v197_v34 = vsel %vm195_vm4, %v196_v26, %v194_v32 }
  0x34   : > { %v199_v35 = vmax.f32 %v197_v34, 1e-06 }
  0x36   : > { %v202_v37 = vcombine.low %v198_v33, %v199_v35 }
  0x38   : > { %v209_v38 = vrot.slane %v202_v37, %v208_v36 }
  0x3a   : > { %v216_v39 = vrot.slane %v209_v38, %v208_v36 }
  0x3c   : > { %222 = vst.msk [vmem:[%s161_s21] sm:$0x3] %vm220_vm5, %v216_v39 }
  0x3d PF: > { %s12_s9 = sadd.s32 1, %s321_s9  }
  0x3e   : > { %p9_p4 = scmp.ge.s32.totalorder %s12_s9, 4  }
  0x40   :  { %11 = sbr.rel (!%p9_p4) target bundleno = 1 (0x1), region = 61 }

</bundles_post_ra>
